<compile_context>
chip_gen: v7x
topology: tpu7x:2x2x1
jax: 0.10.0
libtpu: 0.0.40
codegen_flags: <defaults>
</compile_context>

<pallas_src>
import functools
import math

import jax
import jax.numpy as jnp
from jax.experimental import pallas as pl
from jax.experimental.pallas import tpu as pltpu


def _cdiv(a, b):
    return -(-a // b)


def _round_up(x, m):
    return _cdiv(x, m) * m


def _sigmoid_1push(y):
    # sigmoid(t) == 0.5 * tanh(0.5 * t) + 0.5 : a single EUP push per element.
    return 0.5 * jnp.tanh(0.5 * y) + 0.5


# ---------------------------------------------------------------------------
# Kernels
# ---------------------------------------------------------------------------

def _highway_rows_kernel(x_ref, w_ref, b_ref, o_ref, *, num_layers, feat,
                         mm_dtype, num_chunks):
    """Row-major fallback: x tile (TM, D), w (n, D, 2D) with y = x @ W,
    b (n, 1, 2D).  The tile is processed as `num_chunks` row-halves so the MXU
    work of one half overlaps the VPU/EUP tail (sigmoid/relu/blend) of the
    other half across the unrolled layer loop."""
    tm = x_ref.shape[0]
    cs = tm // num_chunks
    # Residual / blend path stays in f32.
    chunks = [x_ref[c * cs:(c + 1) * cs, :].astype(jnp.float32)
              for c in range(num_chunks)]
    for i in range(num_layers):                 # small static n -> fully unrolled
        nxt = []
        for xc in chunks:
            y = jnp.dot(xc.astype(mm_dtype), w_ref[i],
                        preferred_element_type=jnp.float32) + b_ref[i]
            # Lane split below is copy-free only when feat % 128 == 0.
            # TODO(synk): unfused two-matmul fallback for D % 128 != 0 (the
            # slice then materializes a small VMEM copy; correct, just slower).
            g = _sigmoid_1push(y[:, :feat])      # gate lanes   [0, D)
            h = jnp.maximum(y[:, feat:], 0.0)    # linear lanes [D, 2D)
            nxt.append(xc + g * (h - xc))        # == g*h + (1-g)*x
        chunks = nxt
    for c, xc in enumerate(chunks):
        o_ref[c * cs:(c + 1) * cs, :] = xc.astype(o_ref.dtype)


def _highway_ncl_kernel(x_ref, w_ref, b_ref, o_ref, *, num_layers, feat,
                        mm_dtype, num_chunks):
    """NCL-native: x tile (1, D, TL) with L on the lane axis, w (n, 2D, D) with
    y = W @ x, b (n, 2D, 1).  No wrapper transposes; output written straight
    back in (B, D, L) layout."""
    tl = x_ref.shape[-1]
    cs = tl // num_chunks
    chunks = [x_ref[0, :, c * cs:(c + 1) * cs].astype(jnp.float32)
              for c in range(num_chunks)]
    for i in range(num_layers):
        nxt = []
        for xc in chunks:
            y = jnp.dot(w_ref[i], xc.astype(mm_dtype),
                        preferred_element_type=jnp.float32) + b_ref[i]
            # Sublane split: copy-free when feat % 8 == 0.
            g = _sigmoid_1push(y[:feat, :])
            h = jnp.maximum(y[feat:, :], 0.0)
            nxt.append(xc + g * (h - xc))
        chunks = nxt
    for c, xc in enumerate(chunks):
        o_ref[0, :, c * cs:(c + 1) * cs] = xc.astype(o_ref.dtype)


# ---------------------------------------------------------------------------
# Tiling / VMEM heuristics
# ---------------------------------------------------------------------------

_ACT_VMEM_BUDGET = 12 * 1024 * 1024   # per-tile activation budget (f32, incl.
                                      # double-buffered in/out + intermediates)


def _choose_tile_m(M, D):
    mr = _round_up(M, 8)
    if mr <= 64:
        return mr                      # tiny: one block, no pipeline overhead
    if mr <= 1024:
        # 2 grid steps: keeps both v7x TensorCores busy and the pipeline
        # primed; costs only one extra (cheap) step on single-TC v5e/v6e.
        return _round_up(_cdiv(mr, 2), 8)
    # Large M: biggest VMEM-friendly tile (per-step overhead ~0.35us; 512+ row
    # tiles reach ~85% of HBM roofline vs ~63% at 256), then round the step
    # count up to an even number so the two v7x TCs stay balanced.
    cap = max(128, min(1024, (_ACT_VMEM_BUDGET // (28 * D)) // 8 * 8))
    steps = _cdiv(M, cap)
    if steps % 2:
        steps += 1
    return _round_up(_cdiv(M, steps), 8)


def _choose_tile_l(L, B, D):
    cap = max(128, min(1024, (_ACT_VMEM_BUDGET // (28 * D)) // 128 * 128))
    tl = min(cap, _round_up(L, 128))
    if B * _cdiv(L, tl) < 2 and L > 128:
        tl = max(128, _round_up(_cdiv(L, 2), 128))   # >= 2 steps for v7x 2 TCs
    return tl


def _vmem_limit_bytes(tile_act_bytes, const_bytes):
    # Footprint-derived limit: double-buffered in/out + f32 intermediates +
    # resident weights, with headroom.  Never below the default scoped limit
    # (32 MiB) and never above 3/4 of physical VMEM (v7x 64 MiB -> 48 MiB cap,
    # v5e/v6e 128 MiB -> 96 MiB cap).
    need = 8 * tile_act_bytes + 2 * const_bytes + (4 << 20)
    try:
        phys = int(getattr(pltpu.get_tpu_info(), "vmem_capacity_bytes", 64 << 20))
    except Exception:
        phys = 64 << 20
    return int(min(max(need, 32 << 20), max(32 << 20, (phys * 3) // 4)))


# ---------------------------------------------------------------------------
# Host-side wrappers
# ---------------------------------------------------------------------------

def prepare_highway_params(wl, bl, wg, bg, *, use_bf16_matmul=True):
    """Fuse gate+linear weights ONCE (hoisted out of the per-call forward path).

    wl/wg: (n, size, size) in PyTorch (out, in) layout; bl/bg: (n, size).
    Returns an array-only pytree holding both fused layouts:
      w_rows (n, D, 2D) for y = x @ W  (row-major fallback kernel),
      w_ncl  (n, 2D, D) for y = W @ x  (NCL-native kernel),
    plus matching biases.  bf16 weights (default) halve HBM/VMEM traffic and
    hit the bf16-native MXU; the f32 residual path in the kernels is unchanged.
    """
    n, D, _ = wl.shape
    mm_dtype = jnp.bfloat16 if use_bf16_matmul else jnp.float32
    w_ncl = jnp.concatenate([wg, wl], axis=1).astype(mm_dtype)        # (n, 2D, D)
    w_rows = jnp.transpose(w_ncl, (0, 2, 1))                          # (n, D, 2D)
    b_cat = jnp.concatenate([bg, bl], axis=-1).astype(jnp.float32)    # (n, 2D)
    return {
        "w_rows": w_rows, "b_rows": b_cat.reshape(n, 1, 2 * D),
        "w_ncl": w_ncl, "b_ncl": b_cat.reshape(n, 2 * D, 1),
    }


def _forward_ncl(x_ncl, w_ncl, b_ncl, tile_l):
    B, D, L = x_ncl.shape
    n = w_ncl.shape[0]
    mm_dtype = w_ncl.dtype
    if tile_l is None:
        tile_l = _choose_tile_l(L, B, D)
    grid = (B, _cdiv(L, tile_l))            # partial trailing L-block is masked
    num_chunks = 2 if tile_l % 256 == 0 else 1

    kernel = functools.partial(_highway_ncl_kernel, num_layers=n, feat=D,
                               mm_dtype=mm_dtype, num_chunks=num_chunks)

    const_bytes = w_ncl.size * w_ncl.dtype.itemsize + b_ncl.size * 4
    # Grid-resident weights (constant index_map) need no double buffer; only
    # single-buffer them when large enough to matter for v7x's 64 MiB VMEM.
    wb_kwargs = {"pipeline_mode": pl.Buffered(1)} if const_bytes >= (4 << 20) else {}

    cost = pl.CostEstimate(
        flops=int(n * (2 * (2 * D) * D * B * L + 6 * B * L * D)),
        transcendentals=int(n * B * L * D),
        bytes_accessed=int(2 * B * D * L * x_ncl.dtype.itemsize + const_bytes),
    )

    return pl.pallas_call(
        kernel,
        out_shape=jax.ShapeDtypeStruct((B, D, L), x_ncl.dtype),
        grid_spec=pltpu.PrefetchScalarGridSpec(
            num_scalar_prefetch=0,
            grid=grid,
            in_specs=[
                pl.BlockSpec((1, D, tile_l), lambda b, l: (b, 0, l)),
                pl.BlockSpec((n, 2 * D, D), lambda b, l: (0, 0, 0), **wb_kwargs),
                pl.BlockSpec((n, 2 * D, 1), lambda b, l: (0, 0, 0), **wb_kwargs),
            ],
            out_specs=pl.BlockSpec((1, D, tile_l), lambda b, l: (b, 0, l)),
        ),
        compiler_params=pltpu.CompilerParams(
            dimension_semantics=("parallel", "parallel"),
            vmem_limit_bytes=_vmem_limit_bytes(4 * D * tile_l, const_bytes),
        ),
        cost_estimate=cost,
    )(x_ncl, w_ncl, b_ncl)


def _forward_rows(x_ncl, w_rows, b_rows, tile_m):
    B, D, L = x_ncl.shape
    n = w_rows.shape[0]
    mm_dtype = w_rows.dtype
    M = B * L
    # Small-L fallback only: NCL -> rows (B*L, D), feature dim on the lane axis.
    x_rows = jnp.transpose(x_ncl, (0, 2, 1)).reshape(M, D)
    if tile_m is None:
        tile_m = _choose_tile_m(M, D)
    grid_m = _cdiv(M, tile_m)               # partial trailing row-block is masked
    num_chunks = 2 if (tile_m >= 128 and tile_m % 16 == 0) else 1

    kernel = functools.partial(_highway_rows_kernel, num_layers=n, feat=D,
                               mm_dtype=mm_dtype, num_chunks=num_chunks)

    const_bytes = w_rows.size * w_rows.dtype.itemsize + b_rows.size * 4
    wb_kwargs = {"pipeline_mode": pl.Buffered(1)} if const_bytes >= (4 << 20) else {}

    cost = pl.CostEstimate(
        flops=int(n * (2 * M * D * 2 * D + 6 * M * D)),
        transcendentals=int(n * M * D),
        bytes_accessed=int(2 * M * D * x_rows.dtype.itemsize + const_bytes),
    )

    out_rows = pl.pallas_call(
        kernel,
        out_shape=jax.ShapeDtypeStruct((M, D), x_rows.dtype),
        grid_spec=pltpu.PrefetchScalarGridSpec(
            num_scalar_prefetch=0,
            grid=(grid_m,),
            in_specs=[
                pl.BlockSpec((tile_m, D), lambda i: (i, 0)),
                pl.BlockSpec((n, D, 2 * D), lambda i: (0, 0, 0), **wb_kwargs),
                pl.BlockSpec((n, 1, 2 * D), lambda i: (0, 0, 0), **wb_kwargs),
            ],
            out_specs=pl.BlockSpec((tile_m, D), lambda i: (i, 0)),
        ),
        compiler_params=pltpu.CompilerParams(
            dimension_semantics=("parallel",),
            vmem_limit_bytes=_vmem_limit_bytes(4 * tile_m * D, const_bytes),
        ),
        cost_estimate=cost,
    )(x_rows, w_rows, b_rows)

    return jnp.transpose(out_rows.reshape(B, L, D), (0, 2, 1))


def highway_forward(x_ncl, params, *, tile_m=None, tile_l=None):
    """x_ncl: (B, size, L); params from prepare_highway_params() -> (B, size, L)."""
    B, D, L = x_ncl.shape
    if L >= 128:
        # NCL-native: no transposes, output written straight back as (B, D, L).
        return _forward_ncl(x_ncl, params["w_ncl"], params["b_ncl"], tile_l)
    return _forward_rows(x_ncl, params["w_rows"], params["b_rows"], tile_m)


def highway_reference(x_ncl, wl, bl, wg, bg):
    """Pure-JAX reference mirroring the PyTorch forward."""
    x = jnp.transpose(x_ncl, (0, 2, 1)).astype(jnp.float32)   # (B, L, D)
    n = wl.shape[0]
    for i in range(n):
        g = jax.nn.sigmoid(jnp.einsum("bld,od->blo", x, wg[i]) + bg[i])
        h = jax.nn.relu(jnp.einsum("bld,od->blo", x, wl[i]) + bl[i])
        x = g * h + (1.0 - g) * x
    return jnp.transpose(x, (0, 2, 1))


if __name__ == "__main__":
    # Module-consistent config: Highway(layer_num=2, size=128).
    layer_num, size = 2, 128

    key = jax.random.PRNGKey(0)
    kx, kwl, kbl, kwg, kbg = jax.random.split(key, 5)

    # PyTorch nn.Linear-style init: U(-1/sqrt(size), 1/sqrt(size)).
    bound = 1.0 / math.sqrt(size)
    wl = jax.random.uniform(kwl, (layer_num, size, size), jnp.float32, -bound, bound)
    bl = jax.random.uniform(kbl, (layer_num, size), jnp.float32, -bound, bound)
    wg = jax.random.uniform(kwg, (layer_num, size, size), jnp.float32, -bound, bound)
    bg = jax.random.uniform(kbg, (layer_num, size), jnp.float32, -bound, bound)

    # Fused weights prepared ONCE (hoisted out of the forward path).
    params_bf16 = prepare_highway_params(wl, bl, wg, bg, use_bf16_matmul=True)
    params_f32 = prepare_highway_params(wl, bl, wg, bg, use_bf16_matmul=False)

    fwd = jax.jit(highway_forward, static_argnames=("tile_m", "tile_l"))

    def check(x, params, atol, rtol):
        out = jax.block_until_ready(fwd(x, params))
        ref = highway_reference(x, wl, bl, wg, bg)
        assert out.shape == x.shape
        assert jnp.allclose(out, ref, atol=atol, rtol=rtol), \
            float(jnp.max(jnp.abs(out - ref)))

    # A: module-consistent shape (batch=2, size=128, seq=8): row path, 1 block.
    xA = jax.random.normal(kx, (2, size, 8), dtype=jnp.float32)
    check(xA, params_f32, 1e-4, 1e-4)     # exact-dtype parity with reference
    check(xA, params_bf16, 1e-1, 1e-1)    # default bf16-MXU perf path

    # B: row path with a masked partial trailing block (M=150, grid=2).
    xB = jax.random.normal(jax.random.PRNGKey(1), (3, size, 50), dtype=jnp.float32)
    check(xB, params_f32, 1e-4, 1e-4)

    # C: NCL-native path (L multiple of 128): no transposes, lane split active.
    xC = jax.random.normal(jax.random.PRNGKey(2), (2, size, 256), dtype=jnp.float32)
    check(xC, params_f32, 1e-4, 1e-4)
    check(xC, params_bf16, 1e-1, 1e-1)

    # D: row path with the half-tile software pipeline (tile_m=128, 2 chunks).
    xD = jax.random.normal(jax.random.PRNGKey(3), (4, size, 64), dtype=jnp.float32)
    check(xD, params_f32, 1e-4, 1e-4)

    print("KERNEL_OK")
</pallas_src>

<mosaic_0001>
module attributes {stable_mosaic.version = 11 : i64} {
  func.func @_highway_rows_kernel(%arg0: i32, %arg1: memref<16x128xf32, #tpu.memory_space<vmem>>, %arg2: memref<2x128x256xf32, #tpu.memory_space<vmem>>, %arg3: memref<2x1x256xf32, #tpu.memory_space<vmem>>, %arg4: memref<16x128xf32, #tpu.memory_space<vmem>>) attributes {dimension_semantics = [#tpu.dimension_semantics<parallel>], iteration_bounds = array<i64: 1>, scalar_prefetch = 0 : i64, scratch_operands = 0 : i64, tpu.core_type = #tpu.core_type<tc>, window_params = [{transform_indices = @transform_0, window_bounds = array<i64: 16, 128>}, {pipeline_mode = #tpu.pipeline_mode<synchronous>, transform_indices = @transform_1, window_bounds = array<i64: 2, 128, 256>}, {pipeline_mode = #tpu.pipeline_mode<synchronous>, transform_indices = @transform_2, window_bounds = array<i64: 2, 1, 256>}, {transform_indices = @transform_3, window_bounds = array<i64: 16, 128>}]} {
    %c0 = arith.constant 0 : index
    %c0_0 = arith.constant 0 : index
    %0 = vector.load %arg1[%c0, %c0_0] : memref<16x128xf32, #tpu.memory_space<vmem>>, vector<16x128xf32>
    %c0_1 = arith.constant 0 : index
    %c0_2 = arith.constant 0 : index
    %c0_3 = arith.constant 0 : index
    %1 = vector.load %arg2[%c0_1, %c0_2, %c0_3] : memref<2x128x256xf32, #tpu.memory_space<vmem>>, vector<1x128x256xf32>
    %2 = vector.shape_cast %1 : vector<1x128x256xf32> to vector<128x256xf32>
    %cst = arith.constant dense<0.000000e+00> : vector<16x256xf32>
    %3 = tpu.matmul %0, %2, %cst {dimension_numbers = #tpu.dot_dimension_numbers<[1], [0], [0], [1], [0, 0, 1, 1], [], []>} : vector<16x128xf32>, vector<128x256xf32>, vector<16x256xf32> -> vector<16x256xf32>
    %c0_4 = arith.constant 0 : index
    %c0_5 = arith.constant 0 : index
    %c0_6 = arith.constant 0 : index
    %4 = vector.load %arg3[%c0_4, %c0_5, %c0_6] : memref<2x1x256xf32, #tpu.memory_space<vmem>>, vector<1x1x256xf32>
    %5 = vector.shape_cast %4 : vector<1x1x256xf32> to vector<1x256xf32>
    %6 = vector.broadcast %5 : vector<1x256xf32> to vector<16x256xf32>
    %7 = arith.addf %3, %6 : vector<16x256xf32>
    %8 = vector.extract_strided_slice %7 {offsets = [0, 0], sizes = [16, 128], strides = [1, 1]} : vector<16x256xf32> to vector<16x128xf32>
    %cst_7 = arith.constant 5.000000e-01 : f32
    %9 = vector.broadcast %cst_7 : f32 to vector<16x128xf32>
    %10 = arith.mulf %9, %8 : vector<16x128xf32>
    %11 = math.tanh %10 : vector<16x128xf32>
    %cst_8 = arith.constant 5.000000e-01 : f32
    %12 = vector.broadcast %cst_8 : f32 to vector<16x128xf32>
    %13 = arith.mulf %12, %11 : vector<16x128xf32>
    %cst_9 = arith.constant 5.000000e-01 : f32
    %14 = vector.broadcast %cst_9 : f32 to vector<16x128xf32>
    %15 = arith.addf %13, %14 : vector<16x128xf32>
    %16 = vector.extract_strided_slice %7 {offsets = [0, 128], sizes = [16, 128], strides = [1, 1]} : vector<16x256xf32> to vector<16x128xf32>
    %cst_10 = arith.constant 0.000000e+00 : f32
    %17 = vector.broadcast %cst_10 : f32 to vector<16x128xf32>
    %18 = arith.maximumf %16, %17 : vector<16x128xf32>
    %19 = arith.subf %18, %0 : vector<16x128xf32>
    %20 = arith.mulf %15, %19 : vector<16x128xf32>
    %21 = arith.addf %0, %20 : vector<16x128xf32>
    %c1 = arith.constant 1 : index
    %c0_11 = arith.constant 0 : index
    %c0_12 = arith.constant 0 : index
    %22 = vector.load %arg2[%c1, %c0_11, %c0_12] : memref<2x128x256xf32, #tpu.memory_space<vmem>>, vector<1x128x256xf32>
    %23 = vector.shape_cast %22 : vector<1x128x256xf32> to vector<128x256xf32>
    %cst_13 = arith.constant dense<0.000000e+00> : vector<16x256xf32>
    %24 = tpu.matmul %21, %23, %cst_13 {dimension_numbers = #tpu.dot_dimension_numbers<[1], [0], [0], [1], [0, 0, 1, 1], [], []>} : vector<16x128xf32>, vector<128x256xf32>, vector<16x256xf32> -> vector<16x256xf32>
    %c1_14 = arith.constant 1 : index
    %c0_15 = arith.constant 0 : index
    %c0_16 = arith.constant 0 : index
    %25 = vector.load %arg3[%c1_14, %c0_15, %c0_16] : memref<2x1x256xf32, #tpu.memory_space<vmem>>, vector<1x1x256xf32>
    %26 = vector.shape_cast %25 : vector<1x1x256xf32> to vector<1x256xf32>
    %27 = vector.broadcast %26 : vector<1x256xf32> to vector<16x256xf32>
    %28 = arith.addf %24, %27 : vector<16x256xf32>
    %29 = vector.extract_strided_slice %28 {offsets = [0, 0], sizes = [16, 128], strides = [1, 1]} : vector<16x256xf32> to vector<16x128xf32>
    %cst_17 = arith.constant 5.000000e-01 : f32
    %30 = vector.broadcast %cst_17 : f32 to vector<16x128xf32>
    %31 = arith.mulf %30, %29 : vector<16x128xf32>
    %32 = math.tanh %31 : vector<16x128xf32>
    %cst_18 = arith.constant 5.000000e-01 : f32
    %33 = vector.broadcast %cst_18 : f32 to vector<16x128xf32>
    %34 = arith.mulf %33, %32 : vector<16x128xf32>
    %cst_19 = arith.constant 5.000000e-01 : f32
    %35 = vector.broadcast %cst_19 : f32 to vector<16x128xf32>
    %36 = arith.addf %34, %35 : vector<16x128xf32>
    %37 = vector.extract_strided_slice %28 {offsets = [0, 128], sizes = [16, 128], strides = [1, 1]} : vector<16x256xf32> to vector<16x128xf32>
    %cst_20 = arith.constant 0.000000e+00 : f32
    %38 = vector.broadcast %cst_20 : f32 to vector<16x128xf32>
    %39 = arith.maximumf %37, %38 : vector<16x128xf32>
    %40 = arith.subf %39, %21 : vector<16x128xf32>
    %41 = arith.mulf %36, %40 : vector<16x128xf32>
    %42 = arith.addf %21, %41 : vector<16x128xf32>
    %c0_21 = arith.constant 0 : index
    %c0_22 = arith.constant 0 : index
    %43 = vector.load %arg4[%c0_21, %c0_22] : memref<16x128xf32, #tpu.memory_space<vmem>>, vector<16x128xf32>
    tpu.vector_store %arg4[%c0_21, %c0_22], %42 {strides = array<i32>} : memref<16x128xf32, #tpu.memory_space<vmem>>, vector<16x128xf32>,
    return
  }
  func.func @transform_0(%arg0: i32) -> (i32, i32) {
    %c0_i32 = arith.constant 0 : i32
    %c0_i32_0 = arith.constant 0 : i32
    return %arg0, %c0_i32 : i32, i32
  }
  func.func @transform_1(%arg0: i32) -> (i32, i32, i32) {
    %c0_i32 = arith.constant 0 : i32
    %c0_i32_0 = arith.constant 0 : i32
    %c0_i32_1 = arith.constant 0 : i32
    %c0_i32_2 = arith.constant 0 : i32
    return %c0_i32, %c0_i32_0, %c0_i32_1 : i32, i32, i32
  }
  func.func @transform_2(%arg0: i32) -> (i32, i32, i32) {
    %c0_i32 = arith.constant 0 : i32
    %c0_i32_0 = arith.constant 0 : i32
    %c0_i32_1 = arith.constant 0 : i32
    %c0_i32_2 = arith.constant 0 : i32
    return %c0_i32, %c0_i32_0, %c0_i32_1 : i32, i32, i32
  }
  func.func @transform_3(%arg0: i32) -> (i32, i32) {
    %c0_i32 = arith.constant 0 : i32
    %c0_i32_0 = arith.constant 0 : i32
    return %arg0, %c0_i32 : i32, i32
  }
}

</mosaic_0001>

<bundles_post_ra>
// kernel: highway_forward.1
= control target key start
LH: loop header
LB: loop body
LE: loop exit
PB: predicated region body
PF: predicated region fallthrough
CT: control target
= control target key end

     0   :  { %8 = vsyncpa [#allocation3], 0  ;;  %s584_s0 = inlined_call_operand.hbm [shape: f32[16,128], index: 0, kind: input, shape index: {}]   ;;  %s585_s1 = inlined_call_operand.hbm [shape: f32[2,128,256], index: 1, kind: input, shape index: {}]   ;;  %s586_s2 = inlined_call_operand.vmem [shape: f32[2,1,256], index: 2, kind: input, shape index: {}]   ;;  %s587_s3 = inlined_call_operand.hbm [shape: f32[16,128], index: 3, kind: output, shape index: {}]  }
   0x1   :  { %9 = vsyncpa [#allocation6], 0 }
   0x2   :  { %10 = vsyncpa [#allocation4], 0  ;;  %s494_s12 = smov [#allocation2]   ;;  %s422_s16 = scalar_lea.hbm %s584_s0, 256 }
   0x3   :  { %s16_s13 = sshll.u32 %s494_s12, 4  ;;  %p423_p0 = scmp.ne.s32.totalorder %s584_s0, %s422_s16  ;;  %s17_s13 = int_to_ptr.vmem [resolvable:$true] %s16_s13 }
   0x4   :  { %p426_p1 = scmp.lt.u32.totalorder %s422_s16, %s584_s0 }
   0x6   :  { %p428_p2 = pnand %p426_p1, %p423_p0 }
   0x8   :  { %431 = shalt.err (!%p428_p2)
}
   0x9   :  { %s432_s21 = scalar_lea.vmem %s17_s13, 256  ;;  %p437_p4 = scmp.lt.s32.totalorder %s17_s13, %s17_s13 }
   0xa   :  { %p433_p3 = scmp.ne.s32.totalorder %s17_s13, %s432_s21  ;;  %p438_p5 = scmp.lt.s32.totalorder %s432_s21, %s432_s21 }
   0xc   :  { %p439_p6 = por %p438_p5, %p437_p4 }
   0xe   :  { %p440_p7 = pnand %p439_p6, %p433_p3 }
  0x10   :  { %443 = shalt.err (!%p440_p7)
}
  0x11   :  { %s495_s22 = smov 128   ;;  %s496_s23 = smov 8  }
  0x12   :  { %22 = dma.hbm_to_vmem [thread:$0]  %s584_s0, 256, %s17_s13, [#allocation3], %s495_s22, %s495_s22, %s496_s23  }
  0x13   :  { %s497_s26 = smov [#allocation5]   ;;  %s444_s30 = scalar_lea.hbm %s585_s1, 8192 }
  0x14   :  { %s28_s27 = sshll.u32 %s497_s26, 4  ;;  %p445_p8 = scmp.ne.s32.totalorder %s585_s1, %s444_s30  ;;  %s29_s27 = int_to_ptr.vmem [resolvable:$true] %s28_s27 }
  0x15   :  { %p448_p9 = scmp.lt.u32.totalorder %s444_s30, %s585_s1 }
  0x17   :  { %p450_p10 = pnand %p448_p9, %p445_p8 }
  0x19   :  { %453 = shalt.err (!%p450_p10)
}
  0x1a   :  { %s454_s8 = scalar_lea.vmem %s29_s27, 8192  ;;  %p459_p12 = scmp.lt.s32.totalorder %s29_s27, %s29_s27 }
  0x1b   :  { %p455_p11 = scmp.ne.s32.totalorder %s29_s27, %s454_s8  ;;  %p460_p13 = scmp.lt.s32.totalorder %s454_s8, %s454_s8 }
  0x1d   :  { %p461_p0 = por %p460_p13, %p459_p12 }
  0x1f   :  { %p462_p1 = pnand %p461_p0, %p455_p11 }
  0x21   :  { %465 = shalt.err (!%p462_p1)
}
  0x22   :  { %s498_s0 = smov 256   ;;  %s499_s9 = smov 16  }
  0x23   :  { %34 = dma.hbm_to_vmem [thread:$0]  %s585_s1, 8192, %s29_s27, [#allocation6], %s498_s0, %s498_s0, %s499_s9  }
  0x24   :  { %488 = dma.done.wait [#allocation3], 256  }
  0x25   :  { %489 = vsyncadd [#allocation3], 4294967040 }
  0x26   :  { %490 = dma.done.wait [#allocation6], 8192  }
  0x27   :  { %491 = vsyncadd [#allocation6], 4294959104  ;;  %v500_v0 = vmov 0.0   ;;  %v46_v1 = vld [vmem:[#allocation5 + $0x8] sm:$0xff]  ;;  %v48_v2 = vld [vmem:[#allocation5 + $0x18] sm:$0xff] }
  0x28   :  { %153 = vmatprep.mubr.f32.mxu0 %v500_v0  ;;  %292 = vmatprep.mubr.f32.mxu1 %v500_v0  ;;  %v45_v3 = vld [vmem:[#allocation5] sm:$0xff]  ;;  %v342_v4 = vpack.c.bf16 %v48_v2, %v46_v1  ;;  %v47_v5 = vld [vmem:[#allocation5 + $0x10] sm:$0xff]  ;;  %v50_v6 = vld [vmem:[#allocation5 + $0x28] sm:$0xff] }
  0x29   :  { %v52_v7 = vld [vmem:[#allocation5 + $0x38] sm:$0xff]  ;;  %v344_v8 = vpack.c.bf16 %v47_v5, %v45_v3  ;;  %v49_v10 = vld [vmem:[#allocation5 + $0x20] sm:$0xff]  ;;  %v51_v11 = vld [vmem:[#allocation5 + $0x30] sm:$0xff] }
  0x2a   :  { %v346_v9 = vpack.c.bf16 %v52_v7, %v50_v6  ;;  %v54_v12 = vld [vmem:[#allocation5 + $0x48] sm:$0xff]  ;;  %343 = vmatprep.subr.bf16.mxu0 %v342_v4  ;;  %v56_v13 = vld [vmem:[#allocation5 + $0x58] sm:$0xff]  ;;  %v348_v14 = vpack.c.bf16 %v51_v11, %v49_v10  ;;  %v53_v16 = vld [vmem:[#allocation5 + $0x40] sm:$0xff] }
  0x2b   :  { %345 = vmatpush1.bf16.msra.mxu0 %v344_v8  ;;  %v350_v15 = vpack.c.bf16 %v56_v13, %v54_v12  ;;  %v55_v17 = vld [vmem:[#allocation5 + $0x50] sm:$0xff]  ;;  %v58_v18 = vld [vmem:[#allocation5 + $0x68] sm:$0xff]  ;;  %v60_v19 = vld [vmem:[#allocation5 + $0x78] sm:$0xff] }
  0x2c   :  { %347 = vmatprep.subr.bf16.mxu0 %v346_v9  ;;  %v352_v20 = vpack.c.bf16 %v55_v17, %v53_v16  ;;  %v354_v21 = vpack.c.bf16 %v60_v19, %v58_v18  ;;  %v57_v22 = vld [vmem:[#allocation5 + $0x60] sm:$0xff]  ;;  %v59_v23 = vld [vmem:[#allocation5 + $0x70] sm:$0xff]  ;;  %v62_v24 = vld [vmem:[#allocation5 + $0x88] sm:$0xff] }
  0x2d   :  { %v64_v25 = vld [vmem:[#allocation5 + $0x98] sm:$0xff]  ;;  %v61_v26 = vld [vmem:[#allocation5 + $0x80] sm:$0xff]  ;;  %v63_v27 = vld [vmem:[#allocation5 + $0x90] sm:$0xff]  ;;  %v356_v30 = vpack.c.bf16 %v59_v23, %v57_v22 }
  0x2e   :  { %v184_v28 = vld [vmem:[#allocation5 + $0x108] sm:$0xff]  ;;  %v186_v29 = vld [vmem:[#allocation5 + $0x118] sm:$0xff]  ;;  %v183_v32 = vld [vmem:[#allocation5 + $0x100] sm:$0xff]  ;;  %v358_v35 = vpack.c.bf16 %v64_v25, %v62_v24  ;;  %v360_v44 = vpack.c.bf16 %v63_v27, %v61_v26 }
  0x2f   :  { %349 = vmatpush1.bf16.msra.mxu0 %v348_v14  ;;  %v374_v31 = vpack.c.bf16 %v186_v29, %v184_v28  ;;  %v185_v33 = vld [vmem:[#allocation5 + $0x110] sm:$0xff]  ;;  %v188_v34 = vld [vmem:[#allocation5 + $0x128] sm:$0xff]  ;;  %v190_v37 = vld [vmem:[#allocation5 + $0x138] sm:$0xff] }
  0x30   :  { %351 = vmatprep.subr.bf16.mxu0 %v350_v15  ;;  %v376_v36 = vpack.c.bf16 %v185_v33, %v183_v32  ;;  %v187_v38 = vld [vmem:[#allocation5 + $0x120] sm:$0xff]  ;;  %v189_v39 = vld [vmem:[#allocation5 + $0x130] sm:$0xff]  ;;  %v66_v40 = vld [vmem:[#allocation5 + $0xa8] sm:$0xff]  ;;  %v378_v42 = vpack.c.bf16 %v190_v37, %v188_v34 }
  0x31   :  { %v68_v41 = vld [vmem:[#allocation5 + $0xb8] sm:$0xff]  ;;  %375 = vmatprep.subr.bf16.mxu1 %v374_v31  ;;  %v380_v43 = vpack.c.bf16 %v189_v39, %v187_v38  ;;  %v65_v46 = vld [vmem:[#allocation5 + $0xa0] sm:$0xff]  ;;  %v67_v47 = vld [vmem:[#allocation5 + $0xb0] sm:$0xff] }
  0x32   :  { %377 = vmatpush1.bf16.msra.mxu1 %v376_v36  ;;  %v362_v45 = vpack.c.bf16 %v68_v41, %v66_v40  ;;  %v70_v48 = vld [vmem:[#allocation5 + $0xc8] sm:$0xff]  ;;  %v72_v49 = vld [vmem:[#allocation5 + $0xd8] sm:$0xff]  ;;  %v364_v50 = vpack.c.bf16 %v67_v47, %v65_v46  ;;  %v69_v52 = vld [vmem:[#allocation5 + $0xc0] sm:$0xff]  ;;  %v79_v36 = vlaneseq }
  0x33   :  { %353 = vmatpush1.bf16.msra.mxu0 %v352_v20  ;;  %379 = vmatprep.subr.bf16.mxu1 %v378_v42  ;;  %v366_v51 = vpack.c.bf16 %v72_v49, %v70_v48  ;;  %v71_v53 = vld [vmem:[#allocation5 + $0xd0] sm:$0xff]  ;;  %v74_v54 = vld [vmem:[#allocation5 + $0xe8] sm:$0xff]  ;;  %v76_v55 = vld [vmem:[#allocation5 + $0xf8] sm:$0xff] }
  0x34   :  { %355 = vmatprep.subr.bf16.mxu0 %v354_v21  ;;  %v368_v56 = vpack.c.bf16 %v71_v53, %v69_v52  ;;  %v370_v57 = vpack.c.bf16 %v76_v55, %v74_v54  ;;  %v73_v58 = vld [vmem:[#allocation5 + $0xe0] sm:$0xff]  ;;  %v75_v59 = vld [vmem:[#allocation5 + $0xf0] sm:$0xff]  ;;  %v555_v62 = vld [vmem:[#allocation2 + $0x8] sm:$0xff]  ;;  %v80_v37 = vshrl.u32 %v79_v36, 7 }
  0x35   :  { %v372_v60 = vpack.c.bf16 %v75_v59, %v73_v58  ;;  %v551_v61 = vld [vmem:[#allocation2] sm:$0xff]  ;;  %v192_v63 = vld [vmem:[#allocation5 + $0x148] sm:$0xff]  ;;  %v194_v1 = vld [vmem:[#allocation5 + $0x158] sm:$0xff] }
  0x36   :  { %381 = vmatpush1.bf16.msra.mxu1 %v380_v43  ;;  %v382_v2 = vpack.c.bf16 %v194_v1, %v192_v63  ;;  %v191_v3 = vld [vmem:[#allocation5 + $0x140] sm:$0xff]  ;;  %v193_v4 = vld [vmem:[#allocation5 + $0x150] sm:$0xff]  ;;  %v196_v6 = vld [vmem:[#allocation5 + $0x168] sm:$0xff]  ;;  %v81_v38 = vsub.s32 0, %v80_v37 }
  0x37   :  { %357 = vmatpush1.bf16.msra.mxu0 %v356_v30  ;;  %v384_v5 = vpack.c.bf16 %v193_v4, %v191_v3  ;;  %v198_v7 = vld [vmem:[#allocation5 + $0x178] sm:$0xff]  ;;  %v195_v9 = vld [vmem:[#allocation5 + $0x160] sm:$0xff]  ;;  %v197_v10 = vld [vmem:[#allocation5 + $0x170] sm:$0xff] }
  0x38   :  { %359 = vmatprep.subr.bf16.mxu0 %v358_v35  ;;  %383 = vmatprep.subr.bf16.mxu1 %v382_v2  ;;  %v386_v8 = vpack.c.bf16 %v198_v7, %v196_v6  ;;  %v388_v11 = vpack.c.bf16 %v197_v10, %v195_v9  ;;  %v200_v12 = vld [vmem:[#allocation5 + $0x188] sm:$0xff]  ;;  %v202_v13 = vld [vmem:[#allocation5 + $0x198] sm:$0xff]  ;;  %v199_v15 = vld [vmem:[#allocation5 + $0x180] sm:$0xff] }
  0x39   :  { %v390_v14 = vpack.c.bf16 %v202_v13, %v200_v12  ;;  %v201_v16 = vld [vmem:[#allocation5 + $0x190] sm:$0xff]  ;;  %v204_v18 = vld [vmem:[#allocation5 + $0x1a8] sm:$0xff]  ;;  %v206_v19 = vld [vmem:[#allocation5 + $0x1b8] sm:$0xff] }
  0x3a   :  { %385 = vmatpush1.bf16.msra.mxu1 %v384_v5  ;;  %v392_v17 = vpack.c.bf16 %v201_v16, %v199_v15  ;;  %v394_v20 = vpack.c.bf16 %v206_v19, %v204_v18  ;;  %v203_v21 = vld [vmem:[#allocation5 + $0x1a0] sm:$0xff]  ;;  %v205_v22 = vld [vmem:[#allocation5 + $0x1b0] sm:$0xff]  ;;  %v208_v24 = vld [vmem:[#allocation5 + $0x1c8] sm:$0xff] }
  0x3b   :  { %361 = vmatpush1.bf16.msra.mxu0 %v360_v44  ;;  %387 = vmatprep.subr.bf16.mxu1 %v386_v8  ;;  %v396_v23 = vpack.c.bf16 %v205_v22, %v203_v21  ;;  %v210_v25 = vld [vmem:[#allocation5 + $0x1d8] sm:$0xff]  ;;  %v207_v27 = vld [vmem:[#allocation5 + $0x1c0] sm:$0xff]  ;;  %v209_v28 = vld [vmem:[#allocation5 + $0x1d0] sm:$0xff]  ;;  %v85_v44 = vsub.s32 1, %v80_v37 }
  0x3c   :  { %363 = vmatprep.subr.bf16.mxu0 %v362_v45  ;;  %v398_v26 = vpack.c.bf16 %v210_v25, %v208_v24  ;;  %v400_v29 = vpack.c.bf16 %v209_v28, %v207_v27  ;;  %v212_v30 = vld [vmem:[#allocation5 + $0x1e8] sm:$0xff]  ;;  %v214_v31 = vld [vmem:[#allocation5 + $0x1f8] sm:$0xff]  ;;  %v211_v33 = vld [vmem:[#allocation5 + $0x1e0] sm:$0xff] }
  0x3d   :  { %v402_v32 = vpack.c.bf16 %v214_v31, %v212_v30  ;;  %v213_v34 = vld [vmem:[#allocation5 + $0x1f0] sm:$0xff] }
  0x3e   :  { %389 = vmatpush1.bf16.msra.mxu1 %v388_v11  ;;  %v404_v35 = vpack.c.bf16 %v213_v34, %v211_v33  ;;  %v77_v39 = vld [vmem:[%s586_s2] sm:$0x3]  ;;  %v341_v6 = vld [vmem:[%s586_s2 + $0x2] sm:$0x3]  ;;  %s501_s2 = smov [#allocation7]  }
  0x3f   :  { %365 = vmatpush1.bf16.msra.mxu0 %v364_v50  ;;  %391 = vmatprep.subr.bf16.mxu1 %v390_v14  ;;  %v82_v40 = vrot.slane %v77_v39, %v81_v38  ;;  %v86_v49 = vrot.slane %v77_v39, %v85_v44  ;;  %v221_v7 = vrot.slane %v341_v6, %v81_v38  ;;  %s328_s15 = sshll.u32 %s501_s2, 4  ;;  %s329_s15 = int_to_ptr.vmem [resolvable:$true] %s328_s15 }
  0x40   :  { %367 = vmatprep.subr.bf16.mxu0 %v366_v51  ;;  %v225_v14 = vrot.slane %v341_v6, %v85_v44  ;;  %s466_s16 = scalar_lea.vmem %s329_s15, 256  ;;  %p471_p3 = scmp.lt.s32.totalorder %s329_s15, %s329_s15 }
  0x41   :  { %p467_p2 = scmp.ne.s32.totalorder %s329_s15, %s466_s16  ;;  %p472_p4 = scmp.lt.s32.totalorder %s466_s16, %s466_s16 }
  0x42   :  { %393 = vmatpush1.bf16.msra.mxu1 %v392_v17 }
  0x43   :  { %369 = vmatpush1.bf16.msra.mxu0 %v368_v56  ;;  %395 = vmatprep.subr.bf16.mxu1 %v394_v20  ;;  %p473_p5 = por %p472_p4, %p471_p3 }
  0x44   :  { %371 = vmatprep.subr.bf16.mxu0 %v370_v57 }
  0x45   :  { %p474_p6 = pnand %p473_p5, %p467_p2 }
  0x46   :  { %397 = vmatpush1.bf16.msra.mxu1 %v396_v23 }
  0x47   :  { %373 = vmatpush1.bf16.msra.mxu0 %v372_v60  ;;  %399 = vmatprep.subr.bf16.mxu1 %v398_v26 }
  0x4a   :  { %154 = vmatmul.mubr.f32.vlgmr.msra.gmra.mrb[0].mxu0 %v551_v61  ;;  %401 = vmatpush1.bf16.msra.mxu1 %v400_v29 }
  0x4b   :  { %159 = vmatprep.mubr.f32.mxu0 %v500_v0  ;;  %403 = vmatprep.subr.bf16.mxu1 %v402_v32 }
  0x4e   :  { %160 = vmatmul.mubr.f32.gmra.mrb[2].mxu0 %v555_v62  ;;  %405 = vmatpush1.bf16.msra.mxu1 %v404_v35 }
 0x11d   :  { %v155_v41 = vpop.f32.mrb[0].mxu0 }
 0x11e   :  { %v156_v42 = vadd.f32 %v155_v41, %v82_v40  ;;  %v157_v43 = vpop.f32.mrb[1].mxu0 }
 0x11f   :  { %v158_v51 = vadd.f32 %v157_v43, %v86_v49 }
 0x120   :  { %v166_v45 = vmul.f32 0.5, %v156_v42 }
 0x121   :  { %v161_v46 = vpop.f32.mrb[2].mxu0  ;;  %v174_v52 = vmax.f32 %v158_v51, 0.0 }
 0x122   :  { %414 = vtanh.f32 %v166_v45  ;;  %v162_v47 = vadd.f32 %v161_v46, %v82_v40  ;;  %v163_v48 = vpop.f32.mrb[3].mxu0 }
 0x123   :  { %v164_v53 = vadd.f32 %v163_v48, %v86_v49  ;;  %v176_v57 = vsub.f32 %v174_v52, %v551_v61 }
 0x124   :  { %v167_v50 = vmul.f32 0.5, %v162_v47 }
 0x125   :  { %v175_v58 = vmax.f32 %v164_v53, 0.0 }
 0x126   :  { %416 = vtanh.f32 %v167_v50 }
 0x127   :  { %v177_v2 = vsub.f32 %v175_v58, %v555_v62 }
 0x12c   :  { %v415_v54 = vpop.eup %414 }
 0x12d   :  { %v170_v55 = vmul.f32 0.5, %v415_v54 }
 0x12f   :  { %v172_v56 = vadd.f32 0.5, %v170_v55 }
 0x130   :  { %v417_v59 = vpop.eup %416 }
 0x131   :  { %v178_v60 = vmul.f32 %v176_v57, %v172_v56  ;;  %v171_v63 = vmul.f32 0.5, %v417_v59 }
 0x133   :  { %v173_v1 = vadd.f32 0.5, %v171_v63  ;;  %v180_v3 = vadd.f32 %v178_v60, %v551_v61 }
 0x135   :  { %v179_v4 = vmul.f32 %v177_v2, %v173_v1  ;;  %293 = vmatmul.mubr.f32.vlgmr.msra.gmra.mrb[0].mxu1 %v180_v3 }
 0x136   :  { %298 = vmatprep.mubr.f32.mxu1 %v500_v0 }
 0x137   :  { %v181_v5 = vadd.f32 %v179_v4, %v555_v62 }
 0x139   :  { %299 = vmatmul.mubr.f32.gmra.mrb[2].mxu1 %v181_v5 }
 0x208   :  { %v294_v8 = vpop.f32.mrb[0].mxu1 }
 0x209   :  { %v295_v9 = vadd.f32 %v294_v8, %v221_v7  ;;  %v296_v10 = vpop.f32.mrb[1].mxu1 }
 0x20a   :  { %v297_v0 = vadd.f32 %v296_v10, %v225_v14 }
 0x20b   :  { %v305_v11 = vmul.f32 0.5, %v295_v9 }
 0x20c   :  { %v300_v12 = vpop.f32.mrb[2].mxu1  ;;  %v313_v16 = vmax.f32 %v297_v0, 0.0 }
 0x20d   :  { %418 = vtanh.f32 %v305_v11  ;;  %v301_v13 = vadd.f32 %v300_v12, %v221_v7  ;;  %v302_v61 = vpop.f32.mrb[3].mxu1 }
 0x20e   :  { %v303_v62 = vadd.f32 %v302_v61, %v225_v14  ;;  %v315_v20 = vsub.f32 %v313_v16, %v180_v3 }
 0x20f   :  { %v306_v15 = vmul.f32 0.5, %v301_v13 }
 0x210   :  { %v314_v21 = vmax.f32 %v303_v62, 0.0 }
 0x211   :  { %420 = vtanh.f32 %v306_v15 }
 0x212   :  { %v316_v26 = vsub.f32 %v314_v21, %v181_v5 }
 0x217   :  { %v419_v17 = vpop.eup %418 }
 0x218   :  { %v309_v18 = vmul.f32 0.5, %v419_v17 }
 0x21a   :  { %v311_v19 = vadd.f32 0.5, %v309_v18 }
 0x21b   :  { %v421_v22 = vpop.eup %420 }
 0x21c   :  { %v317_v23 = vmul.f32 %v315_v20, %v311_v19  ;;  %v310_v24 = vmul.f32 0.5, %v421_v22 }
 0x21e   :  { %v312_v25 = vadd.f32 0.5, %v310_v24  ;;  %v319_v27 = vadd.f32 %v317_v23, %v180_v3 }
 0x220   :  { %v318_v28 = vmul.f32 %v316_v26, %v312_v25  ;;  %321 = vst [vmem:[#allocation7] sm:$0xff] %v319_v27 }
 0x222   :  { %v320_v29 = vadd.f32 %v318_v28, %v181_v5 }
 0x224   :  { %322 = vst [vmem:[#allocation7 + $0x8] sm:$0xff] %v320_v29 }
 0x225   :  { %477 = shalt.err (!%p474_p6)
}
 0x226   :  { %s478_s19 = scalar_lea.hbm %s587_s3, 256 }
 0x227   :  { %p479_p7 = scmp.ne.s32.totalorder %s587_s3, %s478_s19  ;;  %p482_p8 = scmp.lt.u32.totalorder %s478_s19, %s587_s3 }
 0x229   :  { %p484_p9 = pnand %p482_p8, %p479_p7 }
 0x22b   :  { %487 = shalt.err (!%p484_p9)
}
 0x22c   :  { %334 = dma.vmem_to_hbm [thread:$0]  %s329_s15, 256, %s587_s3, [#allocation4], %s495_s22, %s495_s22, %s496_s23  }
 0x22d   :  { %492 = dma.done.wait [#allocation4], 256  }
 0x22e   :  { %493 = vsyncadd [#allocation4], 4294967040 }
 0x22f   :  { %338 = vsyncpa [#allocation3], 1 }
 0x230   :  { %339 = vsyncpa [#allocation6], 1 }
 0x231   :  { %340 = vsyncpa [#allocation4], 1 }

</bundles_post_ra>
